<compile_context>
chip_gen: v7x
topology: tpu7x:2x2x1
jax: 0.10.0
libtpu: 0.0.40
codegen_flags: <defaults>
</compile_context>

<pallas_src>
import functools

import jax
import jax.numpy as jnp
from jax import lax
from jax.experimental import pallas as pl
from jax.experimental.pallas import tpu as pltpu


def _default_vmem_limit():
    # ~3/4 of physical VMEM per TensorCore, capped at 96 MiB (v5e/v6e have
    # 128 MiB; v7x has 64 MiB -> ~48 MiB), never below the 32 MiB safe default.
    try:
        cap = int(pltpu.get_tpu_info().vmem_capacity_bytes)
    except Exception:  # pragma: no cover - conservative fallback
        cap = 0
    limit = cap * 3 // 4 if cap > 0 else 32 * 1024 * 1024
    return int(min(max(limit, 32 * 1024 * 1024), 96 * 1024 * 1024))


_VMEM_LIMIT = _default_vmem_limit()

# Two output grid axes (N-tiles outer, M-tiles inner), both data-parallel;
# there is no reduction axis anymore (K is untiled / weight-resident).
_COMPILER_PARAMS = pltpu.CompilerParams(
    dimension_semantics=("parallel", "parallel"),
    vmem_limit_bytes=_VMEM_LIMIT,
)

_TM_CAP = 512   # max streamed-patch rows per grid step
_TN_CAP = 512   # max output channels per grid step (full for all ResNet widths)


def _round_up(x, m):
    return (x + m - 1) // m * m


def _pad2(a, rows, cols, dtype=None):
    if dtype is not None:
        a = a.astype(dtype)
    if a.shape == (rows, cols):
        return a
    return jnp.pad(a, ((0, rows - a.shape[0]), (0, cols - a.shape[1])))


def _choose_tm(M, cap=_TM_CAP):
    """Pick an M tile that (a) is a multiple of 8, (b) divides the padded M
    exactly when possible (no pad/slice round trip), and (c) yields >= 2 M
    tiles so both v7x TensorCores get work."""
    Mp = _round_up(M, 8)
    if Mp <= 8:
        return Mp, Mp
    start = min(cap, Mp // 2) // 8 * 8
    for t in range(start, 7, -8):
        if Mp % t == 0:
            return t, Mp
    tm = min(cap, _round_up((Mp + 1) // 2, 8))
    return tm, _round_up(Mp, tm)


# ----------------------------- Pallas kernels ------------------------------ #
# Each kernel does one full-K GEMM per grid step: weights are VMEM-resident,
# the patch block is streamed, folded BN (+ residual/shortcut + ReLU) is the
# epilogue of the same step.  No accumulator scratch, no pl.when phases.

def _conv_bn_kernel(p_ref, w_ref, s_ref, b_ref, o_ref, *, relu):
    acc = jnp.dot(p_ref[...], w_ref[...], preferred_element_type=jnp.float32)
    y = acc * s_ref[...] + b_ref[...]
    if relu:
        y = jnp.maximum(y, 0.0)
    o_ref[...] = y.astype(o_ref.dtype)


def _conv_bn_proj_add_relu_kernel(p_ref, w_ref, s2_ref, b2_ref,
                                  xs_ref, ws_ref, ss_ref, bs_ref, o_ref):
    # conv2 + BN2, shortcut 1x1-conv + BNs, residual add, ReLU — one kernel.
    res = jnp.dot(xs_ref[...], ws_ref[...], preferred_element_type=jnp.float32)
    res = res * ss_ref[...] + bs_ref[...]
    acc = jnp.dot(p_ref[...], w_ref[...], preferred_element_type=jnp.float32)
    y = acc * s2_ref[...] + b2_ref[...] + res
    o_ref[...] = jnp.maximum(y, 0.0).astype(o_ref.dtype)


def _conv_bn_add_relu_kernel(p_ref, w_ref, s_ref, b_ref, r_ref, o_ref):
    acc = jnp.dot(p_ref[...], w_ref[...], preferred_element_type=jnp.float32)
    y = acc * s_ref[...] + b_ref[...] + r_ref[...].astype(jnp.float32)
    o_ref[...] = jnp.maximum(y, 0.0).astype(o_ref.dtype)


# ----------------------------- kernel wrappers ------------------------------ #

def conv_bn(patches, w, scale, bias, *, relu, out_dtype=jnp.bfloat16):
    M, K = patches.shape
    C = w.shape[1]
    Kp, Cp = _round_up(K, 128), _round_up(C, 128)
    tn = min(Cp, _TN_CAP)
    tm, Mp = _choose_tm(M)

    p = _pad2(patches, Mp, Kp, jnp.bfloat16)
    wm = _pad2(w, Kp, Cp, jnp.bfloat16)            # zero-padded rows/cols
    s = _pad2(scale, 1, Cp)
    b = _pad2(bias, 1, Cp)

    out = pl.pallas_call(
        functools.partial(_conv_bn_kernel, relu=relu),
        out_shape=jax.ShapeDtypeStruct((Mp, Cp), out_dtype),
        grid_spec=pltpu.PrefetchScalarGridSpec(
            num_scalar_prefetch=0,
            grid=(Cp // tn, Mp // tm),             # N outer, M inner (fast)
            in_specs=[
                pl.BlockSpec((tm, Kp), lambda j, i: (i, 0)),   # streamed patches
                pl.BlockSpec((Kp, tn), lambda j, i: (0, j)),   # resident weights
                pl.BlockSpec((1, tn), lambda j, i: (0, j)),    # BN scale
                pl.BlockSpec((1, tn), lambda j, i: (0, j)),    # BN bias
            ],
            out_specs=pl.BlockSpec((tm, tn), lambda j, i: (i, j)),
        ),
        compiler_params=_COMPILER_PARAMS,
    )(p, wm, s, b)
    if (Mp, Cp) != (M, C):
        out = out[:M, :C]
    return out


def conv_bn_proj_add_relu(patches, w, s2, b2, xs, ws, ss, bs):
    M, K = patches.shape
    C = w.shape[1]
    Ks = xs.shape[1]
    Kp, Cp, Ksp = _round_up(K, 128), _round_up(C, 128), _round_up(Ks, 128)
    tn = min(Cp, _TN_CAP)
    tm, Mp = _choose_tm(M)

    p = _pad2(patches, Mp, Kp, jnp.bfloat16)
    wm = _pad2(w, Kp, Cp, jnp.bfloat16)
    xsm = _pad2(xs, Mp, Ksp, jnp.bfloat16)
    wsm = _pad2(ws, Ksp, Cp, jnp.bfloat16)
    s2p, b2p = _pad2(s2, 1, Cp), _pad2(b2, 1, Cp)
    ssp, bsp = _pad2(ss, 1, Cp), _pad2(bs, 1, Cp)

    out = pl.pallas_call(
        _conv_bn_proj_add_relu_kernel,
        out_shape=jax.ShapeDtypeStruct((Mp, Cp), jnp.bfloat16),
        grid_spec=pltpu.PrefetchScalarGridSpec(
            num_scalar_prefetch=0,
            grid=(Cp // tn, Mp // tm),
            in_specs=[
                pl.BlockSpec((tm, Kp), lambda j, i: (i, 0)),    # conv2 patches
                pl.BlockSpec((Kp, tn), lambda j, i: (0, j)),    # conv2 weights (resident)
                pl.BlockSpec((1, tn), lambda j, i: (0, j)),     # BN2 scale
                pl.BlockSpec((1, tn), lambda j, i: (0, j)),     # BN2 bias
                pl.BlockSpec((tm, Ksp), lambda j, i: (i, 0)),   # shortcut 1x1 input
                pl.BlockSpec((Ksp, tn), lambda j, i: (0, j)),   # shortcut weights (resident)
                pl.BlockSpec((1, tn), lambda j, i: (0, j)),     # BNs scale
                pl.BlockSpec((1, tn), lambda j, i: (0, j)),     # BNs bias
            ],
            out_specs=pl.BlockSpec((tm, tn), lambda j, i: (i, j)),
        ),
        compiler_params=_COMPILER_PARAMS,
    )(p, wm, s2p, b2p, xsm, wsm, ssp, bsp)
    if (Mp, Cp) != (M, C):
        out = out[:M, :C]
    return out


def conv_bn_add_relu(patches, w, s2, b2, residual):
    M, K = patches.shape
    C = w.shape[1]
    Kp, Cp = _round_up(K, 128), _round_up(C, 128)
    tn = min(Cp, _TN_CAP)
    tm, Mp = _choose_tm(M)

    p = _pad2(patches, Mp, Kp, jnp.bfloat16)
    wm = _pad2(w, Kp, Cp, jnp.bfloat16)
    r = _pad2(residual, Mp, Cp, jnp.bfloat16)
    s2p, b2p = _pad2(s2, 1, Cp), _pad2(b2, 1, Cp)

    out = pl.pallas_call(
        _conv_bn_add_relu_kernel,
        out_shape=jax.ShapeDtypeStruct((Mp, Cp), jnp.bfloat16),
        grid_spec=pltpu.PrefetchScalarGridSpec(
            num_scalar_prefetch=0,
            grid=(Cp // tn, Mp // tm),
            in_specs=[
                pl.BlockSpec((tm, Kp), lambda j, i: (i, 0)),
                pl.BlockSpec((Kp, tn), lambda j, i: (0, j)),
                pl.BlockSpec((1, tn), lambda j, i: (0, j)),
                pl.BlockSpec((1, tn), lambda j, i: (0, j)),
                pl.BlockSpec((tm, tn), lambda j, i: (i, j)),    # identity residual
            ],
            out_specs=pl.BlockSpec((tm, tn), lambda j, i: (i, j)),
        ),
        compiler_params=_COMPILER_PARAMS,
    )(p, wm, s2p, b2p, r)
    if (Mp, Cp) != (M, C):
        out = out[:M, :C]
    return out


# ------------------------------ JAX glue ----------------------------------- #

def im2col(x_nhwc, ksize, stride, pad):
    """Extract conv patches -> [N*Ho*Wo, ksize*ksize*C] (kh, kw, c ordering)."""
    N, H, W, C = x_nhwc.shape
    xp = jnp.pad(x_nhwc, ((0, 0), (pad, pad), (pad, pad), (0, 0)))
    Ho = (H + 2 * pad - ksize) // stride + 1
    Wo = (W + 2 * pad - ksize) // stride + 1
    cols = []
    for kh in range(ksize):
        for kw in range(ksize):
            cols.append(
                xp[:, kh:kh + stride * Ho:stride, kw:kw + stride * Wo:stride, :])
    patches = jnp.concatenate(cols, axis=-1)  # [N, Ho, Wo, ks*ks*C]
    return patches.reshape(N * Ho * Wo, ksize * ksize * C), (N, Ho, Wo)


def fold_bn(gamma, beta, mean, var, eps=1e-5):
    scale = gamma / jnp.sqrt(var + eps)
    bias = beta - mean * scale
    return scale.reshape(1, -1), bias.reshape(1, -1)


def torch_weight_to_matrix(w_oihw):
    # [Cout, Cin, KH, KW] -> [KH*KW*Cin, Cout], matching im2col (kh, kw, c) order
    cout = w_oihw.shape[0]
    return jnp.transpose(w_oihw, (2, 3, 1, 0)).reshape(-1, cout)


def residual_block(x_nchw, params, stride):
    cin = x_nchw.shape[1]
    cout = params["w1"].shape[0]
    # TODO(synk): inside a full network keep activations NHWC bf16 end-to-end
    # and drop these per-block NCHW<->NHWC transposes from the hot path.
    x = jnp.transpose(x_nchw, (0, 2, 3, 1)).astype(jnp.bfloat16)  # NHWC, bf16

    # conv1 3x3(stride) + BN1 + ReLU -> bf16 intermediate
    p1, (N, Ho, Wo) = im2col(x, 3, stride, 1)
    s1, b1 = fold_bn(*params["bn1"])
    y1 = conv_bn(p1, torch_weight_to_matrix(params["w1"]), s1, b1, relu=True)
    y1 = y1.reshape(N, Ho, Wo, cout)

    # conv2 3x3(1) + BN2, fused with the shortcut + residual add + ReLU.
    # TODO(synk): fuse conv1 -> conv2 (halo'd in-kernel 3x3) so y1 never
    # round-trips through HBM via this im2col.
    p2, _ = im2col(y1, 3, 1, 1)
    s2, b2 = fold_bn(*params["bn2"])
    w2 = torch_weight_to_matrix(params["w2"])

    if stride != 1 or cin != cout:
        xs, _ = im2col(x, 1, stride, 0)           # [M, Cin] strided 1x1 operand
        ss, bs = fold_bn(*params["bns"])
        ws = torch_weight_to_matrix(params["ws"])
        out = conv_bn_proj_add_relu(p2, w2, s2, b2, xs, ws, ss, bs)
    else:
        out = conv_bn_add_relu(p2, w2, s2, b2, x.reshape(N * Ho * Wo, cout))

    out = out.reshape(N, Ho, Wo, cout)
    return jnp.transpose(out, (0, 3, 1, 2))  # back to NCHW (bf16)


# ----------------------------- reference (plain JAX) ------------------------ #

def _conv_nhwc(x, w_oihw, stride, pad):
    w = jnp.transpose(w_oihw, (2, 3, 1, 0))  # HWIO
    return lax.conv_general_dilated(
        x, w, window_strides=(stride, stride), padding=[(pad, pad), (pad, pad)],
        dimension_numbers=("NHWC", "HWIO", "NHWC"))


def residual_block_ref(x_nchw, params, stride):
    cin = x_nchw.shape[1]
    cout = params["w1"].shape[0]
    x = jnp.transpose(x_nchw, (0, 2, 3, 1)).astype(jnp.float32)
    s1, b1 = fold_bn(*params["bn1"])
    y = jnp.maximum(_conv_nhwc(x, params["w1"], stride, 1) * s1 + b1, 0.0)
    s2, b2 = fold_bn(*params["bn2"])
    y = _conv_nhwc(y, params["w2"], 1, 1) * s2 + b2
    if stride != 1 or cin != cout:
        ss, bs = fold_bn(*params["bns"])
        sc = _conv_nhwc(x, params["ws"], stride, 0) * ss + bs
    else:
        sc = x
    out = jnp.maximum(y + sc, 0.0)
    return jnp.transpose(out, (0, 3, 1, 2))


# --------------------------------- main ------------------------------------ #

def make_params(key, cin, cout):
    ks = jax.random.split(key, 15)

    def bn(k0, k1, k2, k3):
        return (1.0 + 0.1 * jax.random.normal(k0, (cout,), jnp.float32),
                0.1 * jax.random.normal(k1, (cout,), jnp.float32),
                0.05 * jax.random.normal(k2, (cout,), jnp.float32),
                1.0 + 0.05 * jax.random.uniform(k3, (cout,), jnp.float32))

    return {
        "w1": 0.1 * jax.random.normal(ks[0], (cout, cin, 3, 3), jnp.float32),
        "w2": 0.1 * jax.random.normal(ks[1], (cout, cout, 3, 3), jnp.float32),
        "ws": 0.1 * jax.random.normal(ks[2], (cout, cin, 1, 1), jnp.float32),
        "bn1": bn(ks[3], ks[4], ks[5], ks[6]),
        "bn2": bn(ks[7], ks[8], ks[9], ks[10]),
        "bns": bn(ks[11], ks[12], ks[13], ks[14]),
    }


if __name__ == "__main__":
    key = jax.random.PRNGKey(0)
    k1, k2, k3, k4 = jax.random.split(key, 4)
    run = jax.jit(residual_block, static_argnames=("stride",))

    # Config 1: projection shortcut path (stride=2, Cin != Cout)
    N, Cin, H, W, Cout, stride = 2, 4, 16, 16, 8, 2
    params = make_params(k1, Cin, Cout)
    x = jax.random.normal(k2, (N, Cin, H, W), jnp.float32)
    out = jax.block_until_ready(run(x, params, stride=stride))
    ref = residual_block_ref(x, params, stride)
    assert out.shape == (N, Cout, H // stride, W // stride), out.shape
    # bf16 MXU operands and bf16 stores (intentional) -> loosened tolerance
    assert jnp.allclose(out.astype(jnp.float32), ref, atol=5e-2, rtol=5e-2), float(
        jnp.max(jnp.abs(out.astype(jnp.float32) - ref)))

    # Config 2: identity shortcut path (stride=1, Cin == Cout)
    params2 = make_params(k3, Cin, Cin)
    x2 = jax.random.normal(k4, (N, Cin, H, W), jnp.float32)
    out2 = jax.block_until_ready(run(x2, params2, stride=1))
    ref2 = residual_block_ref(x2, params2, 1)
    assert out2.shape == (N, Cin, H, W), out2.shape
    assert jnp.allclose(out2.astype(jnp.float32), ref2, atol=5e-2, rtol=5e-2), float(
        jnp.max(jnp.abs(out2.astype(jnp.float32) - ref2)))

    print("KERNEL_OK")
</pallas_src>

<mosaic_0001>
module attributes {stable_mosaic.version = 11 : i64} {
  func.func @_conv_bn_kernel(%arg0: i32, %arg1: i32, %arg2: memref<64x128xbf16, #tpu.memory_space<vmem>>, %arg3: memref<128x128xbf16, #tpu.memory_space<vmem>>, %arg4: memref<1x128xf32, #tpu.memory_space<vmem>>, %arg5: memref<1x128xf32, #tpu.memory_space<vmem>>, %arg6: memref<64x128xbf16, #tpu.memory_space<vmem>>) attributes {dimension_semantics = [#tpu.dimension_semantics<parallel>, #tpu.dimension_semantics<parallel>], iteration_bounds = array<i64: 1, 2>, scalar_prefetch = 0 : i64, scratch_operands = 0 : i64, tpu.core_type = #tpu.core_type<tc>, window_params = [{transform_indices = @transform_0, window_bounds = array<i64: 64, 128>}, {transform_indices = @transform_1, window_bounds = array<i64: 128, 128>}, {transform_indices = @transform_2, window_bounds = array<i64: 1, 128>}, {transform_indices = @transform_3, window_bounds = array<i64: 1, 128>}, {transform_indices = @transform_4, window_bounds = array<i64: 64, 128>}]} {
    %c0 = arith.constant 0 : index
    %c0_0 = arith.constant 0 : index
    %0 = vector.load %arg2[%c0, %c0_0] : memref<64x128xbf16, #tpu.memory_space<vmem>>, vector<64x128xbf16>
    %c0_1 = arith.constant 0 : index
    %c0_2 = arith.constant 0 : index
    %1 = vector.load %arg3[%c0_1, %c0_2] : memref<128x128xbf16, #tpu.memory_space<vmem>>, vector<128x128xbf16>
    %cst = arith.constant dense<0.000000e+00> : vector<64x128xf32>
    %2 = tpu.matmul %0, %1, %cst {dimension_numbers = #tpu.dot_dimension_numbers<[1], [0], [0], [1], [0, 0, 1, 1], [], []>} : vector<64x128xbf16>, vector<128x128xbf16>, vector<64x128xf32> -> vector<64x128xf32>
    %c0_3 = arith.constant 0 : index
    %c0_4 = arith.constant 0 : index
    %3 = vector.load %arg4[%c0_3, %c0_4] : memref<1x128xf32, #tpu.memory_space<vmem>>, vector<1x128xf32>
    %4 = vector.broadcast %3 : vector<1x128xf32> to vector<64x128xf32>
    %5 = arith.mulf %2, %4 : vector<64x128xf32>
    %c0_5 = arith.constant 0 : index
    %c0_6 = arith.constant 0 : index
    %6 = vector.load %arg5[%c0_5, %c0_6] : memref<1x128xf32, #tpu.memory_space<vmem>>, vector<1x128xf32>
    %7 = vector.broadcast %6 : vector<1x128xf32> to vector<64x128xf32>
    %8 = arith.addf %5, %7 : vector<64x128xf32>
    %cst_7 = arith.constant 0.000000e+00 : f32
    %9 = vector.broadcast %cst_7 : f32 to vector<64x128xf32>
    %10 = arith.maximumf %8, %9 : vector<64x128xf32>
    %11 = arith.truncf %10 : vector<64x128xf32> to vector<64x128xbf16>
    %c0_8 = arith.constant 0 : index
    %c0_9 = arith.constant 0 : index
    %12 = vector.load %arg6[%c0_8, %c0_9] : memref<64x128xbf16, #tpu.memory_space<vmem>>, vector<64x128xbf16>
    tpu.vector_store %arg6[%c0_8, %c0_9], %11 {strides = array<i32>} : memref<64x128xbf16, #tpu.memory_space<vmem>>, vector<64x128xbf16>,
    return
  }
  func.func @transform_0(%arg0: i32, %arg1: i32) -> (i32, i32) {
    %c0_i32 = arith.constant 0 : i32
    %c0_i32_0 = arith.constant 0 : i32
    return %arg1, %c0_i32 : i32, i32
  }
  func.func @transform_1(%arg0: i32, %arg1: i32) -> (i32, i32) {
    %c0_i32 = arith.constant 0 : i32
    %c0_i32_0 = arith.constant 0 : i32
    return %c0_i32, %arg0 : i32, i32
  }
  func.func @transform_2(%arg0: i32, %arg1: i32) -> (i32, i32) {
    %c0_i32 = arith.constant 0 : i32
    %c0_i32_0 = arith.constant 0 : i32
    return %c0_i32, %arg0 : i32, i32
  }
  func.func @transform_3(%arg0: i32, %arg1: i32) -> (i32, i32) {
    %c0_i32 = arith.constant 0 : i32
    %c0_i32_0 = arith.constant 0 : i32
    return %c0_i32, %arg0 : i32, i32
  }
  func.func @transform_4(%arg0: i32, %arg1: i32) -> (i32, i32) {
    %c0_i32 = arith.constant 0 : i32
    return %arg1, %arg0 : i32, i32
  }
}

module attributes {stable_mosaic.version = 11 : i64} {
  func.func @_conv_bn_proj_add_relu_kernel(%arg0: i32, %arg1: i32, %arg2: memref<64x128xbf16, #tpu.memory_space<vmem>>, %arg3: memref<128x128xbf16, #tpu.memory_space<vmem>>, %arg4: memref<1x128xf32, #tpu.memory_space<vmem>>, %arg5: memref<1x128xf32, #tpu.memory_space<vmem>>, %arg6: memref<64x128xbf16, #tpu.memory_space<vmem>>, %arg7: memref<128x128xbf16, #tpu.memory_space<vmem>>, %arg8: memref<1x128xf32, #tpu.memory_space<vmem>>, %arg9: memref<1x128xf32, #tpu.memory_space<vmem>>, %arg10: memref<64x128xbf16, #tpu.memory_space<vmem>>) attributes {dimension_semantics = [#tpu.dimension_semantics<parallel>, #tpu.dimension_semantics<parallel>], iteration_bounds = array<i64: 1, 2>, scalar_prefetch = 0 : i64, scratch_operands = 0 : i64, tpu.core_type = #tpu.core_type<tc>, window_params = [{transform_indices = @transform_0, window_bounds = array<i64: 64, 128>}, {transform_indices = @transform_1, window_bounds = array<i64: 128, 128>}, {transform_indices = @transform_2, window_bounds = array<i64: 1, 128>}, {transform_indices = @transform_3, window_bounds = array<i64: 1, 128>}, {transform_indices = @transform_4, window_bounds = array<i64: 64, 128>}, {transform_indices = @transform_5, window_bounds = array<i64: 128, 128>}, {transform_indices = @transform_6, window_bounds = array<i64: 1, 128>}, {transform_indices = @transform_7, window_bounds = array<i64: 1, 128>}, {transform_indices = @transform_8, window_bounds = array<i64: 64, 128>}]} {
    %c0 = arith.constant 0 : index
    %c0_0 = arith.constant 0 : index
    %0 = vector.load %arg6[%c0, %c0_0] : memref<64x128xbf16, #tpu.memory_space<vmem>>, vector<64x128xbf16>
    %c0_1 = arith.constant 0 : index
    %c0_2 = arith.constant 0 : index
    %1 = vector.load %arg7[%c0_1, %c0_2] : memref<128x128xbf16, #tpu.memory_space<vmem>>, vector<128x128xbf16>
    %cst = arith.constant dense<0.000000e+00> : vector<64x128xf32>
    %2 = tpu.matmul %0, %1, %cst {dimension_numbers = #tpu.dot_dimension_numbers<[1], [0], [0], [1], [0, 0, 1, 1], [], []>} : vector<64x128xbf16>, vector<128x128xbf16>, vector<64x128xf32> -> vector<64x128xf32>
    %c0_3 = arith.constant 0 : index
    %c0_4 = arith.constant 0 : index
    %3 = vector.load %arg8[%c0_3, %c0_4] : memref<1x128xf32, #tpu.memory_space<vmem>>, vector<1x128xf32>
    %4 = vector.broadcast %3 : vector<1x128xf32> to vector<64x128xf32>
    %5 = arith.mulf %2, %4 : vector<64x128xf32>
    %c0_5 = arith.constant 0 : index
    %c0_6 = arith.constant 0 : index
    %6 = vector.load %arg9[%c0_5, %c0_6] : memref<1x128xf32, #tpu.memory_space<vmem>>, vector<1x128xf32>
    %7 = vector.broadcast %6 : vector<1x128xf32> to vector<64x128xf32>
    %8 = arith.addf %5, %7 : vector<64x128xf32>
    %c0_7 = arith.constant 0 : index
    %c0_8 = arith.constant 0 : index
    %9 = vector.load %arg2[%c0_7, %c0_8] : memref<64x128xbf16, #tpu.memory_space<vmem>>, vector<64x128xbf16>
    %c0_9 = arith.constant 0 : index
    %c0_10 = arith.constant 0 : index
    %10 = vector.load %arg3[%c0_9, %c0_10] : memref<128x128xbf16, #tpu.memory_space<vmem>>, vector<128x128xbf16>
    %cst_11 = arith.constant dense<0.000000e+00> : vector<64x128xf32>
    %11 = tpu.matmul %9, %10, %cst_11 {dimension_numbers = #tpu.dot_dimension_numbers<[1], [0], [0], [1], [0, 0, 1, 1], [], []>} : vector<64x128xbf16>, vector<128x128xbf16>, vector<64x128xf32> -> vector<64x128xf32>
    %c0_12 = arith.constant 0 : index
    %c0_13 = arith.constant 0 : index
    %12 = vector.load %arg4[%c0_12, %c0_13] : memref<1x128xf32, #tpu.memory_space<vmem>>, vector<1x128xf32>
    %13 = vector.broadcast %12 : vector<1x128xf32> to vector<64x128xf32>
    %14 = arith.mulf %11, %13 : vector<64x128xf32>
    %c0_14 = arith.constant 0 : index
    %c0_15 = arith.constant 0 : index
    %15 = vector.load %arg5[%c0_14, %c0_15] : memref<1x128xf32, #tpu.memory_space<vmem>>, vector<1x128xf32>
    %16 = vector.broadcast %15 : vector<1x128xf32> to vector<64x128xf32>
    %17 = arith.addf %14, %16 : vector<64x128xf32>
    %18 = arith.addf %17, %8 : vector<64x128xf32>
    %cst_16 = arith.constant 0.000000e+00 : f32
    %19 = vector.broadcast %cst_16 : f32 to vector<64x128xf32>
    %20 = arith.maximumf %18, %19 : vector<64x128xf32>
    %21 = arith.truncf %20 : vector<64x128xf32> to vector<64x128xbf16>
    %c0_17 = arith.constant 0 : index
    %c0_18 = arith.constant 0 : index
    %22 = vector.load %arg10[%c0_17, %c0_18] : memref<64x128xbf16, #tpu.memory_space<vmem>>, vector<64x128xbf16>
    tpu.vector_store %arg10[%c0_17, %c0_18], %21 {strides = array<i32>} : memref<64x128xbf16, #tpu.memory_space<vmem>>, vector<64x128xbf16>,
    return
  }
  func.func @transform_0(%arg0: i32, %arg1: i32) -> (i32, i32) {
    %c0_i32 = arith.constant 0 : i32
    %c0_i32_0 = arith.constant 0 : i32
    return %arg1, %c0_i32 : i32, i32
  }
  func.func @transform_1(%arg0: i32, %arg1: i32) -> (i32, i32) {
    %c0_i32 = arith.constant 0 : i32
    %c0_i32_0 = arith.constant 0 : i32
    return %c0_i32, %arg0 : i32, i32
  }
  func.func @transform_2(%arg0: i32, %arg1: i32) -> (i32, i32) {
    %c0_i32 = arith.constant 0 : i32
    %c0_i32_0 = arith.constant 0 : i32
    return %c0_i32, %arg0 : i32, i32
  }
  func.func @transform_3(%arg0: i32, %arg1: i32) -> (i32, i32) {
    %c0_i32 = arith.constant 0 : i32
    %c0_i32_0 = arith.constant 0 : i32
    return %c0_i32, %arg0 : i32, i32
  }
  func.func @transform_4(%arg0: i32, %arg1: i32) -> (i32, i32) {
    %c0_i32 = arith.constant 0 : i32
    %c0_i32_0 = arith.constant 0 : i32
    return %arg1, %c0_i32 : i32, i32
  }
  func.func @transform_5(%arg0: i32, %arg1: i32) -> (i32, i32) {
    %c0_i32 = arith.constant 0 : i32
    %c0_i32_0 = arith.constant 0 : i32
    return %c0_i32, %arg0 : i32, i32
  }
  func.func @transform_6(%arg0: i32, %arg1: i32) -> (i32, i32) {
    %c0_i32 = arith.constant 0 : i32
    %c0_i32_0 = arith.constant 0 : i32
    return %c0_i32, %arg0 : i32, i32
  }
  func.func @transform_7(%arg0: i32, %arg1: i32) -> (i32, i32) {
    %c0_i32 = arith.constant 0 : i32
    %c0_i32_0 = arith.constant 0 : i32
    return %c0_i32, %arg0 : i32, i32
  }
  func.func @transform_8(%arg0: i32, %arg1: i32) -> (i32, i32) {
    %c0_i32 = arith.constant 0 : i32
    return %arg1, %arg0 : i32, i32
  }
}

</mosaic_0001>

<bundles_post_ra>
// kernel: residual_block.2
= control target key start
LH: loop header
LB: loop body
LE: loop exit
PB: predicated region body
PF: predicated region fallthrough
CT: control target
= control target key end

     0   :  { %s824_s15 = smov 0   ;;  %s826_s16 = smov 0   ;;  %s900_s0 = inlined_call_operand.vmem [shape: bf16[128,128], index: 0, kind: input, shape index: {}]   ;;  %s901_s1 = inlined_call_operand.vmem [shape: bf16[128,128], index: 1, kind: input, shape index: {}]   ;;  %s902_s2 = inlined_call_operand.vmem [shape: f32[1,128], index: 2, kind: input, shape index: {}]   ;;  %s903_s3 = inlined_call_operand.vmem [shape: f32[1,128], index: 3, kind: input, shape index: {}]   ;;  %s904_s4 = inlined_call_operand.vmem [shape: bf16[128,128], index: 4, kind: output, shape index: {}]  }
   0x1   :  { %s828_s17 = smov 0  }
   0x2 LB: > { %s23_s18 = sadd.s32 1, %s793_s16  ;;  %p627_p0 = scmp.ge.s32.totalorder %s797_s17, 1  ;;  %s797_s17 = sphi %s828_s17, %s14_s17   ;;  %s793_s16 = sphi %s826_s16, %s906_s16   ;;  %s789_s15 = sphi %s824_s15, %s905_s15  }
   0x3   : > { %p24_p1 = scmp.ge.s32.totalorder %s23_s18, 2  ;;  %p202_p2 = scmp.lt.s32.totalorder %s797_s17, 3 }
   0x5   : > { %s908_s18 = smov (%p24_p1, %s23_s18), 0  ;;  %p203_p3 = pnand %p627_p0, %p202_p2 }
   0x6   : > { %v763_v0 = vld [vmem:[%s901_s1] sm:$0xff] (!%p203_p3)   ;;  %s628_s21 = sshll.u32 (!%p203_p3), %s789_s15, 3  ;;  %v764_v1 = vld [vmem:[%s901_s1 + $0x8] sm:$0xff] (!%p203_p3)   ;;  %v765_v2 = vld [vmem:[%s901_s1 + $0x10] sm:$0xff] (!%p203_p3)  }
   0x7   : > { %206 = sbr.rel (%p203_p3) target bundleno = 263 (0x107), region = 36  ;;  %p242_p4 = scmp.lt.s32.totalorder (!%p203_p3), %s628_s21, 15  ;;  %699 = vmatprep.subr.bf16.mxu0 (!%p203_p3), %v763_v0  ;;  %723 = vmatprep.subr.bf16.mxu1 (!%p203_p3), %v763_v0  ;;  %v766_v3 = vld [vmem:[%s901_s1 + $0x18] sm:$0xff] (!%p203_p3)   ;;  %v767_v6 = vld [vmem:[%s901_s1 + $0x20] sm:$0xff] (!%p203_p3)   ;;  %v768_v7 = vld [vmem:[%s901_s1 + $0x28] sm:$0xff] (!%p203_p3)  }
   0x8   : > { %700 = vmatpush3.bf16.msra.mxu0 (!%p203_p3), %v763_v0  ;;  %731 = vmatpush3.bf16.msra.mxu1 (!%p203_p3), %v763_v0  ;;  %v769_v8 = vld [vmem:[%s901_s1 + $0x30] sm:$0xff] (!%p203_p3)   ;;  %v770_v9 = vld [vmem:[%s901_s1 + $0x38] sm:$0xff] (!%p203_p3)   ;;  %v644_v12 = vld [vmem:[%s902_s2] ss:$0 sm:$0xff] (!%p203_p3) }
   0x9   : > { %701 = vmatprep.subr.bf16.mxu0 (!%p203_p3), %v764_v1  ;;  %724 = vmatprep.subr.bf16.mxu1 (!%p203_p3), %v764_v1  ;;  %v645_v14 = vld [vmem:[%s903_s3] ss:$0 sm:$0xff] (!%p203_p3) }
   0xc   : > { %702 = vmatpush3.bf16.msra.mxu0 (!%p203_p3), %v764_v1  ;;  %732 = vmatpush3.bf16.msra.mxu1 (!%p203_p3), %v764_v1 }
   0xd   : > { %703 = vmatprep.subr.bf16.mxu0 (!%p203_p3), %v765_v2  ;;  %725 = vmatprep.subr.bf16.mxu1 (!%p203_p3), %v765_v2 }
   0xe   : > { %s910_s21 = smov (!%p242_p4, %s628_s21), 15 }
   0xf   : > { %s629_s26 = sshll.u32 %s910_s21, 2 }
  0x10   : > { %s859_s29 = scalar_lea.vmem %s900_s0, %s629_s26  ;;  %704 = vmatpush3.bf16.msra.mxu0 %v765_v2  ;;  %733 = vmatpush3.bf16.msra.mxu1 %v765_v2  ;;  %s264_s24 = scalar_lea.vmem %s904_s4, %s629_s26 }
  0x11   : > { %v771_v4 = vld [vmem:[%s859_s29] sm:$0xff]   ;;  %v772_v5 = vld [vmem:[%s859_s29 + $0x10] sm:$0xff]   ;;  %705 = vmatprep.subr.bf16.mxu0 %v766_v3  ;;  %726 = vmatprep.subr.bf16.mxu1 %v766_v3  ;;  %v773_v10 = vld [vmem:[%s859_s29 + $0x8] sm:$0xff]  }
  0x12   : > { %715 = vmatprep.mubr.bf16.mxu0 %v771_v4  ;;  %719 = vmatprep.mubr.bf16.mxu1 %v772_v5  ;;  %v774_v11 = vld [vmem:[%s859_s29 + $0x18] sm:$0xff]  }
  0x14   : > { %706 = vmatpush3.bf16.msra.mxu0 %v766_v3  ;;  %734 = vmatpush3.bf16.msra.mxu1 %v766_v3 }
  0x15   : > { %707 = vmatprep.subr.bf16.mxu0 %v767_v6  ;;  %727 = vmatprep.subr.bf16.mxu1 %v767_v6 }
  0x18   : > { %708 = vmatpush3.bf16.msra.mxu0 %v767_v6  ;;  %735 = vmatpush3.bf16.msra.mxu1 %v767_v6 }
  0x19   : > { %709 = vmatprep.subr.bf16.mxu0 %v768_v7  ;;  %728 = vmatprep.subr.bf16.mxu1 %v768_v7 }
  0x1c   : > { %710 = vmatpush3.bf16.msra.mxu0 %v768_v7  ;;  %736 = vmatpush3.bf16.msra.mxu1 %v768_v7 }
  0x1d   : > { %711 = vmatprep.subr.bf16.mxu0 %v769_v8  ;;  %729 = vmatprep.subr.bf16.mxu1 %v769_v8 }
  0x20   : > { %712 = vmatpush3.bf16.msra.mxu0 %v769_v8  ;;  %737 = vmatpush3.bf16.msra.mxu1 %v769_v8 }
  0x21   : > { %713 = vmatprep.subr.bf16.mxu0 %v770_v9  ;;  %730 = vmatprep.subr.bf16.mxu1 %v770_v9 }
  0x24   : > { %714 = vmatpush3.bf16.msra.mxu0 %v770_v9  ;;  %738 = vmatpush3.bf16.msra.mxu1 %v770_v9 }
  0x27   : > { %716 = vmatmul.mubr.bf16.vlgmr.msra.gmra.mrb[0].mxu0 %v773_v10  ;;  %720 = vmatmul.mubr.bf16.vlgmr.msra.gmra.mrb[0].mxu1 %v774_v11 }
  0xfa   : > { %v717_v13 = vpop.f32.mrb[0].mxu0  ;;  %v721_v15 = vpop.f32.mrb[0].mxu1 }
  0xfb   : > { %v437_v16 = vmul.f32 %v717_v13, %v644_v12  ;;  %v441_v17 = vmul.f32 %v721_v15, %v644_v12  ;;  %v397_v18 = vpop.f32.mrb[1].mxu0  ;;  %v413_v19 = vpop.f32.mrb[1].mxu1 }
  0xfc   : > { %v435_v20 = vmul.f32 %v644_v12, %v397_v18  ;;  %v439_v21 = vmul.f32 %v644_v12, %v413_v19  ;;  %v718_v22 = vpop.f32.mrb[2].mxu0  ;;  %v722_v23 = vpop.f32.mrb[2].mxu1 }
  0xfd   : > { %v452_v24 = vadd.f32 %v645_v14, %v437_v16  ;;  %v456_v25 = vadd.f32 %v645_v14, %v441_v17  ;;  %v438_v26 = vmul.f32 %v718_v22, %v644_v12  ;;  %v442_v27 = vmul.f32 %v722_v23, %v644_v12  ;;  %v400_v28 = vpop.f32.mrb[3].mxu0  ;;  %v416_v29 = vpop.f32.mrb[3].mxu1 }
  0xfe   : > { %v450_v30 = vadd.f32 %v645_v14, %v435_v20  ;;  %v454_v31 = vadd.f32 %v645_v14, %v439_v21  ;;  %v436_v32 = vmul.f32 %v644_v12, %v400_v28  ;;  %v440_v33 = vmul.f32 %v644_v12, %v416_v29 }
  0xff   : > { %v453_v34 = vadd.f32 %v645_v14, %v438_v26  ;;  %v457_v35 = vadd.f32 %v645_v14, %v442_v27  ;;  %v460_v38 = vmax.f32 %v452_v24, 0.0  ;;  %v464_v39 = vmax.f32 %v456_v25, 0.0 }
 0x100   : > { %v451_v36 = vadd.f32 %v645_v14, %v436_v32  ;;  %v455_v37 = vadd.f32 %v645_v14, %v440_v33  ;;  %v458_v42 = vmax.f32 %v450_v30, 0.0  ;;  %v462_v43 = vmax.f32 %v454_v31, 0.0 }
 0x101   : > { %v461_v40 = vmax.f32 %v453_v34, 0.0  ;;  %v465_v41 = vmax.f32 %v457_v35, 0.0 }
 0x102   : > { %v459_v44 = vmax.f32 %v451_v36, 0.0  ;;  %v463_v45 = vmax.f32 %v455_v37, 0.0 }
 0x103   : > { %v672_v46 = vpack.c.bf16 %v461_v40, %v460_v38  ;;  %v682_v47 = vpack.c.bf16 %v465_v41, %v464_v39 }
 0x104   : > { %v667_v48 = vpack.c.bf16 %v459_v44, %v458_v42  ;;  %v677_v49 = vpack.c.bf16 %v463_v45, %v462_v43 }
 0x105   : > { %684 = vst [vmem:[%s264_s24 + $0x8] sm:$0xff] %v672_v46   ;;  %686 = vst [vmem:[%s264_s24 + $0x18] sm:$0xff] %v682_v47  }
 0x106   : > { %668 = vst [vmem:[%s264_s24] sm:$0xff] %v667_v48   ;;  %685 = vst [vmem:[%s264_s24 + $0x10] sm:$0xff] %v677_v49  }
 0x107 PF: > { %s14_s17 = sadd.s32 1, %s797_s17   ;;  %s905_s15 = smov %s793_s16 }
 0x108   : > { %p11_p5 = scmp.ge.s32.totalorder %s14_s17, 4   ;;  %s906_s16 = smov %s908_s18 }
 0x10a   :  { %13 = sbr.rel (!%p11_p5) target bundleno = 2 (0x2), region = 75 }

// kernel: residual_block.3
= control target key start
LH: loop header
LB: loop body
LE: loop exit
PB: predicated region body
PF: predicated region fallthrough
CT: control target
= control target key end

     0   :  { %s1320_s27 = smov 0   ;;  %s1322_s28 = smov 0   ;;  %s1439_s0 = inlined_call_operand.vmem [shape: bf16[128,128], index: 0, kind: input, shape index: {}]   ;;  %s1440_s1 = inlined_call_operand.vmem [shape: bf16[128,128], index: 1, kind: input, shape index: {}]   ;;  %s1441_s2 = inlined_call_operand.vmem [shape: f32[1,128], index: 2, kind: input, shape index: {}]   ;;  %s1442_s3 = inlined_call_operand.vmem [shape: f32[1,128], index: 3, kind: input, shape index: {}]   ;;  %s1443_s4 = inlined_call_operand.vmem [shape: bf16[128,128], index: 4, kind: input, shape index: {}]   ;;  %s1444_s5 = inlined_call_operand.vmem [shape: bf16[128,128], index: 5, kind: input, shape index: {}]   ;;  %s1445_s6 = inlined_call_operand.vmem [shape: f32[1,128], index: 6, kind: input, shape index: {}]   ;;  %s1446_s7 = inlined_call_operand.vmem [shape: f32[1,128], index: 7, kind: input, shape index: {}]   ;;  %s1447_s8 = inlined_call_operand.vmem [shape: bf16[128,128], index: 8, kind: output, shape index: {}]  }
   0x1   :  { %s1324_s29 = smov 0  }
   0x2 LB: > { %s27_s30 = sadd.s32 1, %s1269_s28  ;;  %p1055_p0 = scmp.ge.s32.totalorder %s1273_s29, 1  ;;  %s1273_s29 = sphi %s1324_s29, %s18_s29   ;;  %s1269_s28 = sphi %s1322_s28, %s1449_s28   ;;  %s1265_s27 = sphi %s1320_s27, %s1448_s27  }
   0x3   : > { %p28_p1 = scmp.ge.s32.totalorder %s27_s30, 2  ;;  %p338_p2 = scmp.lt.s32.totalorder %s1273_s29, 3 }
   0x5   : > { %s1451_s30 = smov (%p28_p1, %s27_s30), 0  ;;  %p339_p3 = pnand %p1055_p0, %p338_p2 }
   0x6   : > { %v1227_v0 = vld [vmem:[%s1444_s5] sm:$0xff] (!%p339_p3)   ;;  %s1056_s11 = sshll.u32 (!%p339_p3), %s1265_s27, 3  ;;  %v1229_v2 = vld [vmem:[%s1444_s5 + $0x8] sm:$0xff] (!%p339_p3)   ;;  %v1231_v4 = vld [vmem:[%s1444_s5 + $0x10] sm:$0xff] (!%p339_p3)  }
   0x7   : > { %342 = sbr.rel (%p339_p3) target bundleno = 275 (0x113), region = 52  ;;  %v1228_v1 = vld [vmem:[%s1440_s1] sm:$0xff] (!%p339_p3)   ;;  %1155 = vmatprep.subr.bf16.mxu0 (!%p339_p3), %v1227_v0  ;;  %p401_p4 = scmp.lt.s32.totalorder (!%p339_p3), %s1056_s11, 15  ;;  %v1230_v3 = vld [vmem:[%s1440_s1 + $0x8] sm:$0xff] (!%p339_p3)   ;;  %v1232_v5 = vld [vmem:[%s1440_s1 + $0x10] sm:$0xff] (!%p339_p3)  }
   0x8   : > { %1179 = vmatprep.subr.bf16.mxu1 (!%p339_p3), %v1228_v1  ;;  %1156 = vmatpush3.bf16.msra.mxu0 (!%p339_p3), %v1227_v0  ;;  %v1233_v6 = vld [vmem:[%s1444_s5 + $0x18] sm:$0xff] (!%p339_p3)   ;;  %v1235_v8 = vld [vmem:[%s1444_s5 + $0x20] sm:$0xff] (!%p339_p3)   ;;  %v1237_v10 = vld [vmem:[%s1444_s5 + $0x28] sm:$0xff] (!%p339_p3)  }
   0x9   : > { %1180 = vmatpush3.bf16.msra.mxu1 (!%p339_p3), %v1228_v1  ;;  %1157 = vmatprep.subr.bf16.mxu0 (!%p339_p3), %v1229_v2  ;;  %v1234_v7 = vld [vmem:[%s1440_s1 + $0x18] sm:$0xff] (!%p339_p3)   ;;  %v1236_v9 = vld [vmem:[%s1440_s1 + $0x20] sm:$0xff] (!%p339_p3)   ;;  %v1238_v11 = vld [vmem:[%s1440_s1 + $0x28] sm:$0xff] (!%p339_p3)  }
   0xa   : > { %1181 = vmatprep.subr.bf16.mxu1 (!%p339_p3), %v1230_v3  ;;  %v1239_v14 = vld [vmem:[%s1444_s5 + $0x30] sm:$0xff] (!%p339_p3)   ;;  %v1241_v16 = vld [vmem:[%s1444_s5 + $0x38] sm:$0xff] (!%p339_p3)   ;;  %v1074_v24 = vld [vmem:[%s1445_s6] ss:$0 sm:$0xff] (!%p339_p3) }
   0xb   : > { %v1240_v15 = vld [vmem:[%s1440_s1 + $0x30] sm:$0xff] (!%p339_p3)   ;;  %v1242_v17 = vld [vmem:[%s1440_s1 + $0x38] sm:$0xff] (!%p339_p3)   ;;  %v1088_v25 = vld [vmem:[%s1441_s2] ss:$0 sm:$0xff] (!%p339_p3) }
   0xc   : > { %1158 = vmatpush3.bf16.msra.mxu0 (!%p339_p3), %v1229_v2  ;;  %v1075_v27 = vld [vmem:[%s1446_s7] ss:$0 sm:$0xff] (!%p339_p3) }
   0xd   : > { %1182 = vmatpush3.bf16.msra.mxu1 (!%p339_p3), %v1230_v3  ;;  %1159 = vmatprep.subr.bf16.mxu0 (!%p339_p3), %v1231_v4  ;;  %v1089_v30 = vld [vmem:[%s1442_s3] ss:$0 sm:$0xff] (!%p339_p3) }
   0xe   : > { %s1453_s11 = smov (!%p401_p4, %s1056_s11), 15  ;;  %1183 = vmatprep.subr.bf16.mxu1 %v1232_v5 }
   0xf   : > { %s1362_s26 = sshll.u32 %s1453_s11, 2 }
  0x10   : > { %1160 = vmatpush3.bf16.msra.mxu0 %v1231_v4  ;;  %s1374_s15 = scalar_lea.vmem %s1443_s4, %s1362_s26  ;;  %s1383_s19 = scalar_lea.vmem %s1439_s0, %s1362_s26 }
  0x11   : > { %1184 = vmatpush3.bf16.msra.mxu1 %v1232_v5  ;;  %1161 = vmatprep.subr.bf16.mxu0 %v1233_v6  ;;  %v1243_v12 = vld [vmem:[%s1374_s15] sm:$0xff]   ;;  %v1245_v18 = vld [vmem:[%s1374_s15 + $0x8] sm:$0xff]   ;;  %v1247_v20 = vld [vmem:[%s1374_s15 + $0x10] sm:$0xff]   ;;  %s1424_s22 = scalar_lea.vmem %s1447_s8, %s1362_s26 }
  0x12   : > { %1185 = vmatprep.subr.bf16.mxu1 %v1234_v7  ;;  %v1244_v13 = vld [vmem:[%s1383_s19] sm:$0xff]   ;;  %1171 = vmatprep.mubr.bf16.mxu0 %v1243_v12  ;;  %v1246_v19 = vld [vmem:[%s1383_s19 + $0x8] sm:$0xff]   ;;  %v1248_v21 = vld [vmem:[%s1383_s19 + $0x10] sm:$0xff]  }
  0x13   : > { %1195 = vmatprep.mubr.bf16.mxu1 %v1244_v13  ;;  %v1249_v22 = vld [vmem:[%s1374_s15 + $0x18] sm:$0xff]  }
  0x14   : > { %1162 = vmatpush3.bf16.msra.mxu0 %v1233_v6  ;;  %v1250_v23 = vld [vmem:[%s1383_s19 + $0x18] sm:$0xff]  }
  0x15   : > { %1186 = vmatpush3.bf16.msra.mxu1 %v1234_v7  ;;  %1163 = vmatprep.subr.bf16.mxu0 %v1235_v8 }
  0x16   : > { %1187 = vmatprep.subr.bf16.mxu1 %v1236_v9 }
  0x18   : > { %1164 = vmatpush3.bf16.msra.mxu0 %v1235_v8 }
  0x19   : > { %1188 = vmatpush3.bf16.msra.mxu1 %v1236_v9  ;;  %1165 = vmatprep.subr.bf16.mxu0 %v1237_v10 }
  0x1a   : > { %1189 = vmatprep.subr.bf16.mxu1 %v1238_v11 }
  0x1c   : > { %1166 = vmatpush3.bf16.msra.mxu0 %v1237_v10 }
  0x1d   : > { %1190 = vmatpush3.bf16.msra.mxu1 %v1238_v11  ;;  %1167 = vmatprep.subr.bf16.mxu0 %v1239_v14 }
  0x1e   : > { %1191 = vmatprep.subr.bf16.mxu1 %v1240_v15 }
  0x20   : > { %1168 = vmatpush3.bf16.msra.mxu0 %v1239_v14 }
  0x21   : > { %1192 = vmatpush3.bf16.msra.mxu1 %v1240_v15  ;;  %1169 = vmatprep.subr.bf16.mxu0 %v1241_v16 }
  0x22   : > { %1193 = vmatprep.subr.bf16.mxu1 %v1242_v17 }
  0x24   : > { %1170 = vmatpush3.bf16.msra.mxu0 %v1241_v16 }
  0x25   : > { %1194 = vmatpush3.bf16.msra.mxu1 %v1242_v17 }
  0x27   : > { %1172 = vmatmul.mubr.bf16.vlgmr.msra.gmra.mrb[0].mxu0 %v1245_v18 }
  0x28   : > { %1196 = vmatmul.mubr.bf16.vlgmr.msra.gmra.mrb[0].mxu1 %v1246_v19  ;;  %1175 = vmatprep.mubr.bf16.mxu0 %v1247_v20 }
  0x29   : > { %1199 = vmatprep.mubr.bf16.mxu1 %v1248_v21 }
  0x2f   : > { %1176 = vmatmul.mubr.bf16.gmra.mrb[4].mxu0 %v1249_v22 }
  0x30   : > { %1200 = vmatmul.mubr.bf16.gmra.mrb[4].mxu1 %v1250_v23 }
  0xfa   : > { %v1173_v26 = vpop.f32.mrb[0].mxu0 }
  0xfb   : > { %v612_v28 = vmul.f32 %v1173_v26, %v1074_v24  ;;  %v1197_v29 = vpop.f32.mrb[0].mxu1  ;;  %v572_v31 = vpop.f32.mrb[1].mxu0 }
  0xfc   : > { %v803_v32 = vmul.f32 %v1197_v29, %v1088_v25  ;;  %v610_v33 = vmul.f32 %v1074_v24, %v572_v31  ;;  %v763_v34 = vpop.f32.mrb[1].mxu1  ;;  %v1174_v35 = vpop.f32.mrb[2].mxu0 }
  0xfd   : > { %v627_v36 = vadd.f32 %v1075_v27, %v612_v28  ;;  %v801_v37 = vmul.f32 %v1088_v25, %v763_v34  ;;  %v613_v38 = vmul.f32 %v1174_v35, %v1074_v24  ;;  %v1198_v39 = vpop.f32.mrb[2].mxu1  ;;  %v575_v40 = vpop.f32.mrb[3].mxu0 }
  0xfe   : > { %v818_v41 = vadd.f32 %v1089_v30, %v803_v32  ;;  %v625_v42 = vadd.f32 %v1075_v27, %v610_v33  ;;  %v804_v43 = vmul.f32 %v1198_v39, %v1088_v25  ;;  %v611_v44 = vmul.f32 %v1074_v24, %v575_v40  ;;  %v766_v45 = vpop.f32.mrb[3].mxu1 }
  0xff   : > { %v816_v46 = vadd.f32 %v1089_v30, %v801_v37  ;;  %v628_v47 = vadd.f32 %v1075_v27, %v613_v38  ;;  %v802_v48 = vmul.f32 %v1088_v25, %v766_v45 }
 0x100   : > { %v826_v49 = vadd.f32 %v818_v41, %v627_v36  ;;  %v819_v50 = vadd.f32 %v1089_v30, %v804_v43  ;;  %v626_v51 = vadd.f32 %v1075_v27, %v611_v44 }
 0x101   : > { %v824_v52 = vadd.f32 %v816_v46, %v625_v42  ;;  %v817_v53 = vadd.f32 %v1089_v30, %v802_v48 }
 0x102   : > { %v827_v54 = vadd.f32 %v819_v50, %v628_v47  ;;  %v1177_v55 = vpop.f32.mrb[4].mxu0  ;;  %v834_v56 = vmax.f32 %v826_v49, 0.0 }
 0x103   : > { %v825_v57 = vadd.f32 %v817_v53, %v626_v51  ;;  %v616_v58 = vmul.f32 %v1177_v55, %v1074_v24  ;;  %v1201_v59 = vpop.f32.mrb[4].mxu1  ;;  %v588_v60 = vpop.f32.mrb[5].mxu0  ;;  %v832_v61 = vmax.f32 %v824_v52, 0.0 }
 0x104   : > { %v835_v62 = vmax.f32 %v827_v54, 0.0  ;;  %v807_v63 = vmul.f32 %v1201_v59, %v1088_v25  ;;  %v614_v0 = vmul.f32 %v1074_v24, %v588_v60  ;;  %v779_v1 = vpop.f32.mrb[5].mxu1  ;;  %v1178_v2 = vpop.f32.mrb[6].mxu0 }
 0x105   : > { %v833_v3 = vmax.f32 %v825_v57, 0.0  ;;  %v631_v4 = vadd.f32 %v1075_v27, %v616_v58  ;;  %v805_v5 = vmul.f32 %v1088_v25, %v779_v1  ;;  %v617_v6 = vmul.f32 %v1178_v2, %v1074_v24  ;;  %v1202_v7 = vpop.f32.mrb[6].mxu1  ;;  %v591_v8 = vpop.f32.mrb[7].mxu0 }
 0x106   : > { %v1116_v9 = vpack.c.bf16 %v835_v62, %v834_v56  ;;  %v822_v10 = vadd.f32 %v1089_v30, %v807_v63  ;;  %v629_v11 = vadd.f32 %v1075_v27, %v614_v0  ;;  %v808_v12 = vmul.f32 %v1202_v7, %v1088_v25  ;;  %v782_v13 = vpop.f32.mrb[7].mxu1 }
 0x107   : > { %v1111_v14 = vpack.c.bf16 %v833_v3, %v832_v61  ;;  %v820_v15 = vadd.f32 %v1089_v30, %v805_v5  ;;  %v632_v16 = vadd.f32 %v1075_v27, %v617_v6  ;;  %v615_v17 = vmul.f32 %v1074_v24, %v591_v8 }
 0x108   : > { %1128 = vst [vmem:[%s1424_s22 + $0x8] sm:$0xff] %v1116_v9   ;;  %v830_v18 = vadd.f32 %v822_v10, %v631_v4  ;;  %v823_v19 = vadd.f32 %v1089_v30, %v808_v12  ;;  %v806_v20 = vmul.f32 %v1088_v25, %v782_v13 }
 0x109   : > { %1112 = vst [vmem:[%s1424_s22] sm:$0xff] %v1111_v14   ;;  %v828_v21 = vadd.f32 %v820_v15, %v629_v11  ;;  %v630_v22 = vadd.f32 %v1075_v27, %v615_v17 }
 0x10a   : > { %v831_v23 = vadd.f32 %v823_v19, %v632_v16  ;;  %v821_v26 = vadd.f32 %v1089_v30, %v806_v20  ;;  %v838_v28 = vmax.f32 %v830_v18, 0.0 }
 0x10b   : > { %v836_v32 = vmax.f32 %v828_v21, 0.0 }
 0x10c   : > { %v839_v29 = vmax.f32 %v831_v23, 0.0  ;;  %v829_v31 = vadd.f32 %v821_v26, %v630_v22 }
 0x10e   : > { %v1126_v33 = vpack.c.bf16 %v839_v29, %v838_v28  ;;  %v837_v34 = vmax.f32 %v829_v31, 0.0 }
 0x110   : > { %1130 = vst [vmem:[%s1424_s22 + $0x18] sm:$0xff] %v1126_v33   ;;  %v1121_v35 = vpack.c.bf16 %v837_v34, %v836_v32 }
 0x112   : > { %1129 = vst [vmem:[%s1424_s22 + $0x10] sm:$0xff] %v1121_v35  }
 0x113 PF: > { %s18_s29 = sadd.s32 1, %s1273_s29   ;;  %s1448_s27 = smov %s1269_s28 }
 0x114   : > { %p15_p5 = scmp.ge.s32.totalorder %s18_s29, 4   ;;  %s1449_s28 = smov %s1451_s30 }
 0x116   :  { %17 = sbr.rel (!%p15_p5) target bundleno = 2 (0x2), region = 103 }

</bundles_post_ra>
